<compile_context>
chip_gen: v6e
topology: v6e:2x2x1
jax: 0.10.0
libtpu: 0.0.40
codegen_flags: <defaults>
</compile_context>

<pallas_src>
import functools

import jax
import jax.numpy as jnp
from jax import lax
from jax.experimental import pallas as pl
from jax.experimental.pallas import tpu as pltpu


_LANE = 128          # TPU lane width (output tiles stay multiples of this)
_SUBLANE = 8         # sublane granularity (batch / rank padding)
_K_TILE = 2048       # reduction tile over input_size when it is very wide
_N_TILE = 2048       # output tile when output_size is very wide
_DEF_BLOCK_B = 512   # default batch tile


def _round_up(v, m):
    return ((v + m - 1) // m) * m


def _cdiv(a, b):
    return -(-a // b)


def _vmem_cap_bytes():
    """Generation-aware scoped-VMEM cap (leave headroom for compiler scratch)."""
    try:
        phys = int(pltpu.get_tpu_info().vmem_capacity_bytes)
    except Exception:  # pragma: no cover - conservative fallback
        phys = 64 * 1024 * 1024
    return int(min(0.75 * phys, 100 * 1024 * 1024))


# ----------------------------- kernels -------------------------------------- #

def _lowrank_kernel_fused(x_ref, a_ref, b_ref, bias_ref, o_ref):
    """kt == 1 fast path:  out = (x @ A) @ B + bias  in one shot (no scratch)."""
    t = jnp.dot(x_ref[...], a_ref[...], preferred_element_type=jnp.float32)
    out = jnp.dot(t, b_ref[...], preferred_element_type=jnp.float32)
    o_ref[...] = (out + bias_ref[...].astype(jnp.float32)).astype(o_ref.dtype)


def _lowrank_kernel_ksplit(x_ref, a_ref, b_ref, bias_ref, o_ref, acc_ref, *, k_rem):
    """K-tiled path: accumulate x @ A over the k grid axis, finalize with B."""
    k = pl.program_id(2)
    kt = pl.num_programs(2)

    @pl.when(k == 0)
    def _():
        acc_ref[...] = jnp.zeros_like(acc_ref)

    x = x_ref[...]
    if k_rem:  # static: input_size % tk != 0 -> mask the ragged last K tile
        col = lax.broadcasted_iota(jnp.int32, x.shape, dimension=1)
        valid = jnp.where(k == kt - 1, k_rem, x.shape[1])
        x = jnp.where(col < valid, x, jnp.zeros_like(x))

    acc_ref[...] += jnp.dot(x, a_ref[...], preferred_element_type=jnp.float32)

    @pl.when(k == kt - 1)
    def _():
        out = jnp.dot(acc_ref[...], b_ref[...], preferred_element_type=jnp.float32)
        o_ref[...] = (out + bias_ref[...].astype(jnp.float32)).astype(o_ref.dtype)


# ----------------------------- wrapper -------------------------------------- #

@functools.partial(jax.jit,
                   static_argnames=("dlrt_step", "block_b", "k_tile", "n_tile"))
def psi_low_rank_forward(x, params, dlrt_step, block_b=None,
                         k_tile=None, n_tile=None):
    """Pallas implementation of PSI_LowRankLayer.forward(x, dlrt_step).

    block_b: batch tile (static, default 512).
    k_tile / n_tile: reduction / output tiles (static, multiples of 128);
                     default 2048, only used when input/output are very wide.
    """
    U, S, V, K, L, bias = (params["U"], params["S"], params["V"],
                           params["K"], params["L"], params["bias"])
    batch, input_size = x.shape
    output_size, rank = V.shape

    # Fold every step into  out = (x @ A) @ B + bias.
    if dlrt_step == "K":
        A, B = K, V.T
    elif dlrt_step in ("S", "test"):
        A, B = U, S @ V.T
    elif dlrt_step == "L":
        A, B = U, L.T
    else:
        raise ValueError(f"unknown dlrt_step: {dlrt_step}")

    out_dtype = jnp.result_type(x.dtype, A.dtype, B.dtype, bias.dtype)

    k_tile = _K_TILE if k_tile is None else k_tile
    n_tile = _N_TILE if n_tile is None else n_tile

    # ---- static tile selection (from shapes only) ----
    if block_b is None:
        block_b = _DEF_BLOCK_B
    block_b = _round_up(min(block_b, _round_up(batch, _SUBLANE)), _SUBLANE)
    # v7x has 2 TensorCores: make sure the "parallel" batch axis has >= 2 tiles
    # whenever the batch is large enough for that to be worthwhile.
    if batch > 256 and block_b >= batch:
        block_b = _round_up(_cdiv(batch, 2), _SUBLANE)

    if input_size > 2 * k_tile:            # tile the reduction axis
        tk = k_tile
        kt = _cdiv(input_size, tk)
        in_p = kt * tk                      # A zero-padded along K (weight only)
        k_rem = input_size % tk             # static ragged-tail size (0 if exact)
    else:                                   # common case: single fused K step
        tk = input_size
        kt = 1
        in_p = input_size
        k_rem = 0

    r_p = max(_round_up(rank, _SUBLANE), _SUBLANE)     # narrow rank padding

    if output_size > 2 * n_tile:            # tile the output axis
        tn = n_tile
    else:
        tn = _round_up(output_size, _LANE)  # lane-dense stores
    out_p = _round_up(output_size, tn)
    nt = out_p // tn

    # ---- zero-pad ONLY the (small) weights; x is never copied ----
    if (in_p, r_p) != (input_size, rank):
        A = jnp.pad(A, ((0, in_p - input_size), (0, r_p - rank)))
    if (r_p, out_p) != (rank, output_size):
        B = jnp.pad(B, ((0, r_p - rank), (0, out_p - output_size)))
    bias_row = bias.reshape(1, output_size)
    if out_p != output_size:
        bias_row = jnp.pad(bias_row, ((0, 0), (0, out_p - output_size)))

    # ---- explicit, generation-aware VMEM budget ----
    def _vmem_est(bb):
        return (2 * bb * tk * x.dtype.itemsize            # x (double-buffered)
                + 2 * bb * tn * jnp.dtype(out_dtype).itemsize   # out
                + 2 * tk * r_p * A.dtype.itemsize         # A
                + 2 * r_p * tn * B.dtype.itemsize         # B
                + 2 * tn * bias_row.dtype.itemsize        # bias
                + bb * r_p * 4)                           # f32 accumulator

    cap = _vmem_cap_bytes()
    while _vmem_est(block_b) > 0.8 * cap and block_b > _SUBLANE:
        block_b = max(_round_up(block_b // 2, _SUBLANE), _SUBLANE)
    bt = _cdiv(batch, block_b)
    vmem_limit = int(min(max(int(1.5 * _vmem_est(block_b)), 32 * 1024 * 1024), cap))

    # ---- grid / specs ----
    if kt == 1:
        grid = (bt, nt)
        dims = ("parallel", "parallel")
        in_specs = [
            pl.BlockSpec((block_b, tk), lambda i, j: (i, 0)),    # x tile
            pl.BlockSpec((tk, r_p), lambda i, j: (0, 0)),        # A (resident)
            pl.BlockSpec((r_p, tn), lambda i, j: (0, j)),        # B column tile
            pl.BlockSpec((1, tn), lambda i, j: (0, j)),          # bias tile
        ]
        out_specs = pl.BlockSpec((block_b, tn), lambda i, j: (i, j))
        scratch = []
        kernel = _lowrank_kernel_fused
    else:
        grid = (bt, nt, kt)
        dims = ("parallel", "parallel", "arbitrary")
        in_specs = [
            pl.BlockSpec((block_b, tk), lambda i, j, k: (i, k)),  # x tile
            pl.BlockSpec((tk, r_p), lambda i, j, k: (k, 0)),      # A tile
            pl.BlockSpec((r_p, tn), lambda i, j, k: (0, j)),      # B column tile
            pl.BlockSpec((1, tn), lambda i, j, k: (0, j)),        # bias tile
        ]
        out_specs = pl.BlockSpec((block_b, tn), lambda i, j, k: (i, j))
        scratch = [pltpu.VMEM((block_b, r_p), jnp.float32)]
        kernel = functools.partial(_lowrank_kernel_ksplit, k_rem=k_rem)

    cparams = pltpu.CompilerParams(
        dimension_semantics=dims,
        vmem_limit_bytes=vmem_limit,
    )

    out_padded = pl.pallas_call(
        kernel,
        out_shape=jax.ShapeDtypeStruct((batch, out_p), out_dtype),
        grid_spec=pltpu.PrefetchScalarGridSpec(
            num_scalar_prefetch=0,
            grid=grid,
            in_specs=in_specs,
            out_specs=out_specs,
            scratch_shapes=scratch,
        ),
        compiler_params=cparams,
    )(x, A, B, bias_row)

    if out_p != output_size:
        out_padded = out_padded[:, :output_size]
    return out_padded


# ------------------------- parameter construction --------------------------- #

def init_psi_low_rank_params(key, input_size, output_size, rank):
    """Deterministic replica of PSI_LowRankLayer.__init__ parameter setup."""
    kU, kS, kV, kb = jax.random.split(key, 4)
    U0 = jax.random.normal(kU, (input_size, rank), dtype=jnp.float32)
    S = jax.random.normal(kS, (rank, rank), dtype=jnp.float32)
    V0 = jax.random.normal(kV, (output_size, rank), dtype=jnp.float32)
    U, _ = jnp.linalg.qr(U0, mode="reduced")
    V, _ = jnp.linalg.qr(V0, mode="reduced")
    K = U @ S
    L = V @ S.T
    bias = jax.random.normal(kb, (output_size,), dtype=jnp.float32)
    return {"U": U, "S": S, "V": V, "K": K, "L": L, "bias": bias}


def _reference_forward(x, p, dlrt_step):
    if dlrt_step == "K":
        out = (x @ p["K"]) @ p["V"].T
    elif dlrt_step in ("S", "test"):
        out = ((x @ p["U"]) @ p["S"]) @ p["V"].T
    elif dlrt_step == "L":
        out = (x @ p["U"]) @ p["L"].T
    else:
        raise ValueError(dlrt_step)
    return out + p["bias"]


# TODO(synk): step()/write() (QR-based training update, torch.save/txt export)
# are not part of the forward pass and are intentionally not implemented.

# --------------------------------- main -------------------------------------- #

if __name__ == "__main__":
    key = jax.random.PRNGKey(0)
    k1, k2, k3, k4 = jax.random.split(key, 4)

    ok = True

    # Case 1: tiny layer -> fused fast path (no K / N tiling, single batch tile).
    x1 = jax.random.normal(k1, (16, 32), dtype=jnp.float32)
    p1 = init_psi_low_rank_params(k2, 32, 24, 4)
    for step in ("K", "S", "L", "test"):
        out = jax.block_until_ready(psi_low_rank_forward(x1, p1, step))
        ref = _reference_forward(x1, p1, step)
        if out.shape != ref.shape:
            ok = False
        if not jnp.allclose(out, ref, atol=1e-4, rtol=1e-5):
            ok = False

    # Case 2: small shapes that still exercise the K-reduction grid axis with a
    # ragged K tail (in-kernel mask), the output-dim tiling, a ragged batch
    # (partial blocks, no x padding) and sublane-padded rank.
    x2 = jax.random.normal(k3, (20, 300), dtype=jnp.float32)
    p2 = init_psi_low_rank_params(k4, 300, 300, 7)
    for step in ("K", "S", "L", "test"):
        out = jax.block_until_ready(
            psi_low_rank_forward(x2, p2, step, k_tile=128, n_tile=128))
        ref = _reference_forward(x2, p2, step)
        if out.shape != ref.shape:
            ok = False
        if not jnp.allclose(out, ref, atol=1e-3, rtol=1e-3):
            ok = False

    print("KERNEL_OK" if ok else "KERNEL_MISMATCH")
</pallas_src>

<mosaic_0001>
module attributes {stable_mosaic.version = 11 : i64} {
  func.func @_lowrank_kernel_fused(%arg0: i32, %arg1: i32, %arg2: memref<16x32xf32, #tpu.memory_space<vmem>>, %arg3: memref<32x8xf32, #tpu.memory_space<vmem>>, %arg4: memref<8x128xf32, #tpu.memory_space<vmem>>, %arg5: memref<1x128xf32, #tpu.memory_space<vmem>>, %arg6: memref<16x128xf32, #tpu.memory_space<vmem>>) attributes {dimension_semantics = [#tpu.dimension_semantics<parallel>, #tpu.dimension_semantics<parallel>], iteration_bounds = array<i64: 1, 1>, scalar_prefetch = 0 : i64, scratch_operands = 0 : i64, tpu.core_type = #tpu.core_type<tc>, window_params = [{transform_indices = @transform_0, window_bounds = array<i64: 16, 32>}, {pipeline_mode = #tpu.pipeline_mode<synchronous>, transform_indices = @transform_1, window_bounds = array<i64: 32, 8>}, {transform_indices = @transform_2, window_bounds = array<i64: 8, 128>}, {transform_indices = @transform_3, window_bounds = array<i64: 1, 128>}, {transform_indices = @transform_4, window_bounds = array<i64: 16, 128>}]} {
    %c0 = arith.constant 0 : index
    %c0_0 = arith.constant 0 : index
    %0 = vector.load %arg2[%c0, %c0_0] : memref<16x32xf32, #tpu.memory_space<vmem>>, vector<16x32xf32>
    %c0_1 = arith.constant 0 : index
    %c0_2 = arith.constant 0 : index
    %1 = vector.load %arg3[%c0_1, %c0_2] : memref<32x8xf32, #tpu.memory_space<vmem>>, vector<32x8xf32>
    %cst = arith.constant dense<0.000000e+00> : vector<16x8xf32>
    %2 = tpu.matmul %0, %1, %cst {dimension_numbers = #tpu.dot_dimension_numbers<[1], [0], [0], [1], [0, 0, 1, 1], [], []>} : vector<16x32xf32>, vector<32x8xf32>, vector<16x8xf32> -> vector<16x8xf32>
    %c0_3 = arith.constant 0 : index
    %c0_4 = arith.constant 0 : index
    %3 = vector.load %arg4[%c0_3, %c0_4] : memref<8x128xf32, #tpu.memory_space<vmem>>, vector<8x128xf32>
    %cst_5 = arith.constant dense<0.000000e+00> : vector<16x128xf32>
    %4 = tpu.matmul %2, %3, %cst_5 {dimension_numbers = #tpu.dot_dimension_numbers<[1], [0], [0], [1], [0, 0, 1, 1], [], []>} : vector<16x8xf32>, vector<8x128xf32>, vector<16x128xf32> -> vector<16x128xf32>
    %c0_6 = arith.constant 0 : index
    %c0_7 = arith.constant 0 : index
    %5 = vector.load %arg5[%c0_6, %c0_7] : memref<1x128xf32, #tpu.memory_space<vmem>>, vector<1x128xf32>
    %6 = vector.broadcast %5 : vector<1x128xf32> to vector<16x128xf32>
    %7 = arith.addf %4, %6 : vector<16x128xf32>
    %c0_8 = arith.constant 0 : index
    %c0_9 = arith.constant 0 : index
    %8 = vector.load %arg6[%c0_8, %c0_9] : memref<16x128xf32, #tpu.memory_space<vmem>>, vector<16x128xf32>
    tpu.vector_store %arg6[%c0_8, %c0_9], %7 {strides = array<i32>} : memref<16x128xf32, #tpu.memory_space<vmem>>, vector<16x128xf32>,
    return
  }
  func.func @transform_0(%arg0: i32, %arg1: i32) -> (i32, i32) {
    %c0_i32 = arith.constant 0 : i32
    %c0_i32_0 = arith.constant 0 : i32
    return %arg0, %c0_i32 : i32, i32
  }
  func.func @transform_1(%arg0: i32, %arg1: i32) -> (i32, i32) {
    %c0_i32 = arith.constant 0 : i32
    %c0_i32_0 = arith.constant 0 : i32
    %c0_i32_1 = arith.constant 0 : i32
    return %c0_i32, %c0_i32_0 : i32, i32
  }
  func.func @transform_2(%arg0: i32, %arg1: i32) -> (i32, i32) {
    %c0_i32 = arith.constant 0 : i32
    %c0_i32_0 = arith.constant 0 : i32
    return %c0_i32, %arg1 : i32, i32
  }
  func.func @transform_3(%arg0: i32, %arg1: i32) -> (i32, i32) {
    %c0_i32 = arith.constant 0 : i32
    %c0_i32_0 = arith.constant 0 : i32
    return %c0_i32, %arg1 : i32, i32
  }
  func.func @transform_4(%arg0: i32, %arg1: i32) -> (i32, i32) {
    %c0_i32 = arith.constant 0 : i32
    return %arg0, %arg1 : i32, i32
  }
}

</mosaic_0001>

<bundles_post_ra>
// kernel: psi_low_rank_forward.1
= control target key start
LH: loop header
LB: loop body
LE: loop exit
PB: predicated region body
PF: predicated region fallthrough
CT: control target
= control target key end

     0   :  { %vm24_vm0 = vcmask 261120   ;;  %s324_s0 = inlined_call_operand.vmem [shape: f32[16,32], index: 0, kind: input, shape index: {}]   ;;  %s325_s1 = inlined_call_operand.vmem [shape: f32[32,8], index: 1, kind: input, shape index: {}]   ;;  %s326_s2 = inlined_call_operand.vmem [shape: f32[8,128], index: 2, kind: input, shape index: {}]   ;;  %s327_s3 = inlined_call_operand.vmem [shape: f32[1,128], index: 3, kind: input, shape index: {}]   ;;  %s328_s4 = inlined_call_operand.hbm [shape: f32[16,128], index: 4, kind: output, shape index: {}]  }
   0x1   :  { %v23_v0 = vld [vmem:[%s325_s1 + $0x18] sm:$0xff]  ;;  %v22_v1 = vld [vmem:[%s325_s1 + $0x10] sm:$0xff]  ;;  %v18_v2 = vld [vmem:[%s324_s0] sm:$0xff] }
   0x2   :  { %228 = vmatprep.subr.mxu0 %v23_v0  ;;  %v21_v3 = vld [vmem:[%s325_s1 + $0x8] sm:$0xff]  ;;  %236 = vmatprep.mubr.msk.f32.mxu0 %vm24_vm0, %v18_v2 }
   0x3   :  { %229 = vmatpush3.msra.mxu0 %v23_v0 }
   0x4   :  { %9 = vsyncpa [#allocation3], 0  ;;  %230 = vmatprep.subr.mxu0 %v22_v1  ;;  %v20_v4 = vld [vmem:[%s325_s1] sm:$0xff]  ;;  %v19_v5 = vld [vmem:[%s324_s0 + $0x8] sm:$0xff]  ;;  %vm114_vm1 = vcmask 64512   ;;  %s269_s30 = smov [#allocation2]  }
   0x5   :  { %231 = vmatpush3.msra.mxu0 %v22_v1  ;;  %v106_v6 = vld [vmem:[%s326_s2] sm:$0xff]  ;;  %s203_s0 = sshll.u32 %s269_s30, 4  ;;  %s204_s0 = int_to_ptr.vmem [resolvable:$true] %s203_s0 }
   0x6   :  { %232 = vmatprep.subr.mxu0 %v21_v3  ;;  %239 = vmatprep.subr.mxu1 %v106_v6  ;;  %v216_v9 = vld [vmem:[%s327_s3] ss:$0 sm:$0xff]  ;;  %s247_s2 = scalar_lea.vmem %s204_s0, 256  ;;  %p252_p1 = scmp.lt.s32.totalorder %s204_s0, %s204_s0 }
   0x7   :  { %233 = vmatpush3.msra.mxu0 %v21_v3  ;;  %240 = vmatpush3.msra.mxu1 %v106_v6  ;;  %p248_p0 = scmp.ne.s32.totalorder %s204_s0, %s247_s2  ;;  %p253_p2 = scmp.lt.s32.totalorder %s247_s2, %s247_s2 }
   0x8   :  { %234 = vmatprep.subr.mxu0 %v20_v4 }
   0x9   :  { %235 = vmatpush3.msra.mxu0 %v20_v4  ;;  %p254_p3 = por %p253_p2, %p252_p1 }
   0xa   :  { %237 = vmatmul.mubr.msk.f32.vlgmr.msra.gmra.mxu0 %vm24_vm0, %v19_v5 }
   0xb   :  { %p255_p4 = pnand %p254_p3, %p248_p0 }
  0xca   :  { %v238_v7 = vpop.f32.mrf.mxu0 }
  0xcc   :  { %v97_v8 = vpop.f32.mrf.mxu0 }
  0xcd   :  { %241 = vmatprep.mubr.msk.f32.mxu1 %vm114_vm1, %v97_v8 }
  0xce   :  { %242 = vmatmul.mubr.msk.f32.vlgmr.msra.gmra.mxu1 %vm114_vm1, %v238_v7 }
 0x18e   :  { %v243_v10 = vpop.f32.mrf.mxu1 }
 0x18f   :  { %v193_v11 = vadd.f32 %v243_v10, %v216_v9 }
 0x190   :  { %v187_v12 = vpop.f32.mrf.mxu1 }
 0x191   :  { %197 = vst [vmem:[#allocation2 + $0x8] sm:$0xff] %v193_v11  ;;  %v188_v13 = vadd.f32 %v216_v9, %v187_v12 }
 0x193   :  { %196 = vst [vmem:[#allocation2] sm:$0xff] %v188_v13 }
 0x194   :  { %258 = shalt.err (!%p255_p4)
}
 0x195   :  { %s270_s5 = smov 128   ;;  %s271_s6 = smov 8  }
 0x196   :  { %209 = dma.vmem_to_hbm [thread:$0]  %s204_s0, 256, %s328_s4, [#allocation3], %s270_s5, %s270_s5, %s271_s6  }
 0x197   :  { %267 = dma.done.wait [#allocation3], 256  }
 0x198   :  { %268 = vsyncadd [#allocation3], 4294967040 }
 0x199   :  { %213 = vsyncpa [#allocation3], 1 }

</bundles_post_ra>
